<compile_context>
chip_gen: v7x
topology: tpu7x:2x2x1
jax: 0.10.0
libtpu: 0.0.40
codegen_flags: <defaults>
</compile_context>

<pallas_src>
import functools

import jax
import jax.numpy as jnp
from jax.experimental import pallas as pl
from jax.experimental.pallas import tpu as pltpu


def _round_up(x, m):
    return (x + m - 1) // m * m


def _dice_loss_kernel(x_ref, t_ref, loss_ref, inter_ref, sp_ref, st_ref, *,
                      smooth, ignore_value, num_channels,
                      rows_per_tile, valid_rows, needs_row_mask):
    # x_ref:     (N, C, R, 128) logits tile (native dtype)
    # t_ref:     (N, R, 128)    targets tile (native dtype)
    # loss_ref:  (1, 1)         scalar loss (written on the last grid step)
    # inter_ref/sp_ref/st_ref: (N, 128) lane-parallel persistent partial sums
    j = pl.program_id(0)

    @pl.when(j == 0)
    def _init():
        inter_ref[...] = jnp.zeros_like(inter_ref)
        sp_ref[...] = jnp.zeros_like(sp_ref)
        st_ref[...] = jnp.zeros_like(st_ref)
        loss_ref[...] = jnp.zeros_like(loss_ref)

    x = x_ref[...].astype(jnp.float32)            # (N, C, R, 128)
    t = t_ref[...].astype(jnp.float32)            # (N, R, 128)

    if num_channels == 2:
        # softmax(x, axis=C)[:, 1] == 1 / (1 + exp(x0 - x1)) exactly; one exp, one div.
        p1 = 1.0 / (1.0 + jnp.exp(x[:, 0] - x[:, 1]))
    else:
        m = jnp.max(x, axis=1, keepdims=True)
        e = jnp.exp(x - m)
        p1 = e[:, 1] / jnp.sum(e, axis=1)         # (N, R, 128)

    mask = t != ignore_value                      # (N, R, 128) bool
    if needs_row_mask:
        # Last (ragged) row tile: gate out-of-range rows so OOB garbage never
        # reaches the sums (jnp.where also kills any NaN/Inf from garbage logits).
        row = jax.lax.broadcasted_iota(jnp.int32, (rows_per_tile, 128), 0)
        inb = (j * rows_per_tile + row) < valid_rows
        mask = jnp.logical_and(mask, inb[None, :, :])

    p = jnp.where(mask, p1, 0.0)
    tv = jnp.where(mask, t, 0.0)

    # Lane-parallel partials: reduce only the row axis; keep all 128 lanes live.
    inter_ref[...] += jnp.sum(p * tv, axis=1)
    sp_ref[...] += jnp.sum(p, axis=1)
    st_ref[...] += jnp.sum(tv, axis=1)

    @pl.when(j == pl.num_programs(0) - 1)
    def _finalize():
        inter = jnp.sum(inter_ref[...], axis=-1, keepdims=True)   # (N, 1)
        sp = jnp.sum(sp_ref[...], axis=-1, keepdims=True)
        st = jnp.sum(st_ref[...], axis=-1, keepdims=True)
        dice = (2.0 * inter + smooth) / (sp + st + smooth)
        loss_ref[...] = 1.0 - jnp.mean(dice, keepdims=True)


def dice_loss(logits, targets, *, smooth=1.0, ignore_value=255.0,
              input_vmem_budget=36 * 1024 * 1024):
    """logits: (N, C, H, W); targets: (N, H, W) labels (ignore_value marks ignored).

    Inputs are streamed in their native dtype (bf16 logits / int or float targets
    are fine) and cast to f32 after load inside the kernel.
    """
    N, C, H, W = logits.shape
    P = H * W

    x = logits.reshape(N, C, P)
    t = targets.reshape(N, P)

    # Only pad to the next multiple of 128 (lane width) when strictly needed; the
    # padded targets carry ignore_value so they drop out of every sum.
    Pp = _round_up(P, 128)
    if Pp != P:
        x = jnp.pad(x, ((0, 0), (0, 0), (0, Pp - P)))
        t = jnp.pad(t, ((0, 0), (0, Pp - P)), constant_values=ignore_value)
    rows = Pp // 128

    # (rows, 128) last two dims -> full (8,128) vreg / VMEM occupancy.
    x = x.reshape(N, C, rows, 128)
    t = t.reshape(N, rows, 128)

    # VMEM-budget-driven row tile: double-buffered (x_block + t_block) ~= budget.
    bytes_per_row = (N * C * jnp.dtype(x.dtype).itemsize
                     + N * jnp.dtype(t.dtype).itemsize) * 128
    r_tile = max(8, (input_vmem_budget // (2 * bytes_per_row)) // 8 * 8)
    if r_tile >= rows:
        r_tile = rows                 # single tile; full-extent dim is always legal
    num_tiles = pl.cdiv(rows, r_tile)
    needs_row_mask = (rows % r_tile) != 0

    kernel = functools.partial(
        _dice_loss_kernel,
        smooth=float(smooth), ignore_value=float(ignore_value),
        num_channels=C, rows_per_tile=r_tile, valid_rows=rows,
        needs_row_mask=needs_row_mask)

    # TODO(synk): add a leading "parallel" grid axis (with per-slot accumulators,
    # combined outside the kernel) to use both TensorCores on v7x; the single
    # "arbitrary" reduction axis serializes this loss on one core.
    loss = pl.pallas_call(
        kernel,
        out_shape=jax.ShapeDtypeStruct((1, 1), jnp.float32),
        grid_spec=pltpu.PrefetchScalarGridSpec(
            num_scalar_prefetch=0,
            grid=(num_tiles,),
            in_specs=[
                pl.BlockSpec((N, C, r_tile, 128), lambda j: (0, 0, j, 0)),
                pl.BlockSpec((N, r_tile, 128), lambda j: (0, j, 0)),
            ],
            out_specs=pl.BlockSpec((1, 1), lambda j: (0, 0)),
            scratch_shapes=[
                pltpu.VMEM((N, 128), jnp.float32),   # intersection partials
                pltpu.VMEM((N, 128), jnp.float32),   # sum_p partials
                pltpu.VMEM((N, 128), jnp.float32),   # sum_t partials
            ],
        ),
        compiler_params=pltpu.CompilerParams(
            dimension_semantics=("arbitrary",),        # reduction axis (accumulator)
            vmem_limit_bytes=48 * 1024 * 1024,         # fits v5e/v6e and v7x (64 MiB phys)
        ),
    )(x, t)
    return loss[0, 0]


if __name__ == "__main__":
    key = jax.random.PRNGKey(0)
    k1, k2, k3 = jax.random.split(key, 3)

    N, C, H, W = 2, 2, 16, 16
    logits = jax.random.normal(k1, (N, C, H, W), dtype=jnp.float32)
    labels = (jax.random.uniform(k2, (N, H, W)) > 0.5).astype(jnp.float32)
    ignore = jax.random.uniform(k3, (N, H, W)) > 0.9
    targets = jnp.where(ignore, 255.0, labels).astype(jnp.float32)

    loss = jax.jit(dice_loss)(logits, targets)
    loss = jax.block_until_ready(loss)

    # Pure-JAX reference (mirrors the PyTorch module exactly).
    probs = jax.nn.softmax(logits, axis=1)[:, 1, :, :].reshape(N, -1)
    t = targets.reshape(N, -1)
    mask = (t != 255.0).astype(jnp.float32)
    p = probs * mask
    tt = t * mask
    inter = jnp.sum(p * tt, axis=1)
    dice = (2.0 * inter + 1.0) / (jnp.sum(p, axis=1) + jnp.sum(tt, axis=1) + 1.0)
    ref = 1.0 - jnp.mean(dice)

    assert loss.shape == () and loss.dtype == jnp.float32
    assert jnp.allclose(loss, ref, rtol=1e-4, atol=1e-5), (loss, ref)

    print("KERNEL_OK")
</pallas_src>

<mosaic_0001>
module attributes {stable_mosaic.version = 11 : i64} {
  func.func @_dice_loss_kernel(%arg0: i32, %arg1: memref<2x2x2x128xf32, #tpu.memory_space<vmem>>, %arg2: memref<2x2x128xf32, #tpu.memory_space<vmem>>, %arg3: memref<1x1xf32, #tpu.memory_space<vmem>>, %arg4: memref<2x128xf32, #tpu.memory_space<vmem>>, %arg5: memref<2x128xf32, #tpu.memory_space<vmem>>, %arg6: memref<2x128xf32, #tpu.memory_space<vmem>>) attributes {dimension_semantics = [#tpu.dimension_semantics<arbitrary>], iteration_bounds = array<i64: 1>, scalar_prefetch = 0 : i64, scratch_operands = 3 : i64, tpu.core_type = #tpu.core_type<tc>, window_params = [{transform_indices = @transform_0, window_bounds = array<i64: 2, 2, 2, 128>}, {transform_indices = @transform_1, window_bounds = array<i64: 2, 2, 128>}, {pipeline_mode = #tpu.pipeline_mode<synchronous>, transform_indices = @transform_2, window_bounds = array<i64: 1, 1>}]} {
    %c0_i32 = arith.constant 0 : i32
    %0 = arith.cmpi eq, %arg0, %c0_i32 : i32
    %1 = arith.extui %0 : i1 to i32
    %c0_i32_0 = arith.constant 0 : i32
    %2 = arith.cmpi ne, %1, %c0_i32_0 : i32
    scf.if %2 {
      %cst_28 = arith.constant 0.000000e+00 : f32
      %37 = vector.broadcast %cst_28 : f32 to vector<2x128xf32>
      %c0_29 = arith.constant 0 : index
      %c0_30 = arith.constant 0 : index
      %38 = vector.load %arg4[%c0_29, %c0_30] : memref<2x128xf32, #tpu.memory_space<vmem>>, vector<2x128xf32>
      tpu.vector_store %arg4[%c0_29, %c0_30], %37 {strides = array<i32>} : memref<2x128xf32, #tpu.memory_space<vmem>>, vector<2x128xf32>,
      %cst_31 = arith.constant 0.000000e+00 : f32
      %39 = vector.broadcast %cst_31 : f32 to vector<2x128xf32>
      %c0_32 = arith.constant 0 : index
      %c0_33 = arith.constant 0 : index
      %40 = vector.load %arg5[%c0_32, %c0_33] : memref<2x128xf32, #tpu.memory_space<vmem>>, vector<2x128xf32>
      tpu.vector_store %arg5[%c0_32, %c0_33], %39 {strides = array<i32>} : memref<2x128xf32, #tpu.memory_space<vmem>>, vector<2x128xf32>,
      %cst_34 = arith.constant 0.000000e+00 : f32
      %41 = vector.broadcast %cst_34 : f32 to vector<2x128xf32>
      %c0_35 = arith.constant 0 : index
      %c0_36 = arith.constant 0 : index
      %42 = vector.load %arg6[%c0_35, %c0_36] : memref<2x128xf32, #tpu.memory_space<vmem>>, vector<2x128xf32>
      tpu.vector_store %arg6[%c0_35, %c0_36], %41 {strides = array<i32>} : memref<2x128xf32, #tpu.memory_space<vmem>>, vector<2x128xf32>,
      %cst_37 = arith.constant 0.000000e+00 : f32
      %43 = vector.broadcast %cst_37 : f32 to vector<1x1xf32>
      %c0_38 = arith.constant 0 : index
      %c0_39 = arith.constant 0 : index
      %44 = vector.load %arg3[%c0_38, %c0_39] : memref<1x1xf32, #tpu.memory_space<vmem>>, vector<1x1xf32>
      tpu.vector_store %arg3[%c0_38, %c0_39], %43 {strides = array<i32>} : memref<1x1xf32, #tpu.memory_space<vmem>>, vector<1x1xf32>,
    } else {
    }
    %c0 = arith.constant 0 : index
    %c0_1 = arith.constant 0 : index
    %c0_2 = arith.constant 0 : index
    %c0_3 = arith.constant 0 : index
    %3 = vector.load %arg1[%c0, %c0_1, %c0_2, %c0_3] : memref<2x2x2x128xf32, #tpu.memory_space<vmem>>, vector<2x2x2x128xf32>
    %c0_4 = arith.constant 0 : index
    %c0_5 = arith.constant 0 : index
    %c0_6 = arith.constant 0 : index
    %4 = vector.load %arg2[%c0_4, %c0_5, %c0_6] : memref<2x2x128xf32, #tpu.memory_space<vmem>>, vector<2x2x128xf32>
    %5 = vector.extract_strided_slice %3 {offsets = [0, 0, 0, 0], sizes = [2, 1, 2, 128], strides = [1, 1, 1, 1]} : vector<2x2x2x128xf32> to vector<2x1x2x128xf32>
    %6 = vector.shape_cast %5 : vector<2x1x2x128xf32> to vector<2x2x128xf32>
    %7 = vector.extract_strided_slice %3 {offsets = [0, 1, 0, 0], sizes = [2, 1, 2, 128], strides = [1, 1, 1, 1]} : vector<2x2x2x128xf32> to vector<2x1x2x128xf32>
    %8 = vector.shape_cast %7 : vector<2x1x2x128xf32> to vector<2x2x128xf32>
    %9 = arith.subf %6, %8 : vector<2x2x128xf32>
    %10 = math.exp %9 : vector<2x2x128xf32>
    %cst = arith.constant 1.000000e+00 : f32
    %11 = vector.broadcast %cst : f32 to vector<2x2x128xf32>
    %12 = arith.addf %11, %10 : vector<2x2x128xf32>
    %cst_7 = arith.constant 1.000000e+00 : f32
    %13 = vector.broadcast %cst_7 : f32 to vector<2x2x128xf32>
    %14 = arith.divf %13, %12 : vector<2x2x128xf32>
    %cst_8 = arith.constant 2.550000e+02 : f32
    %15 = vector.broadcast %cst_8 : f32 to vector<2x2x128xf32>
    %16 = arith.cmpf one, %4, %15 : vector<2x2x128xf32>
    %cst_9 = arith.constant 0.000000e+00 : f32
    %17 = vector.broadcast %cst_9 : f32 to vector<2x2x128xf32>
    %18 = arith.select %16, %14, %17 : vector<2x2x128xi1>, vector<2x2x128xf32>
    %cst_10 = arith.constant 0.000000e+00 : f32
    %19 = vector.broadcast %cst_10 : f32 to vector<2x2x128xf32>
    %20 = arith.select %16, %4, %19 : vector<2x2x128xi1>, vector<2x2x128xf32>
    %c0_11 = arith.constant 0 : index
    %c0_12 = arith.constant 0 : index
    %21 = vector.load %arg4[%c0_11, %c0_12] : memref<2x128xf32, #tpu.memory_space<vmem>>, vector<2x128xf32>
    %22 = arith.mulf %18, %20 : vector<2x2x128xf32>
    %cst_13 = arith.constant dense<0.000000e+00> : vector<2x128xf32>
    %23 = vector.multi_reduction <add>, %22, %cst_13 [1] : vector<2x2x128xf32> to vector<2x128xf32>
    %24 = arith.addf %21, %23 : vector<2x128xf32>
    %c0_14 = arith.constant 0 : index
    %c0_15 = arith.constant 0 : index
    %25 = vector.load %arg4[%c0_14, %c0_15] : memref<2x128xf32, #tpu.memory_space<vmem>>, vector<2x128xf32>
    tpu.vector_store %arg4[%c0_14, %c0_15], %24 {strides = array<i32>} : memref<2x128xf32, #tpu.memory_space<vmem>>, vector<2x128xf32>,
    %c0_16 = arith.constant 0 : index
    %c0_17 = arith.constant 0 : index
    %26 = vector.load %arg5[%c0_16, %c0_17] : memref<2x128xf32, #tpu.memory_space<vmem>>, vector<2x128xf32>
    %cst_18 = arith.constant dense<0.000000e+00> : vector<2x128xf32>
    %27 = vector.multi_reduction <add>, %18, %cst_18 [1] : vector<2x2x128xf32> to vector<2x128xf32>
    %28 = arith.addf %26, %27 : vector<2x128xf32>
    %c0_19 = arith.constant 0 : index
    %c0_20 = arith.constant 0 : index
    %29 = vector.load %arg5[%c0_19, %c0_20] : memref<2x128xf32, #tpu.memory_space<vmem>>, vector<2x128xf32>
    tpu.vector_store %arg5[%c0_19, %c0_20], %28 {strides = array<i32>} : memref<2x128xf32, #tpu.memory_space<vmem>>, vector<2x128xf32>,
    %c0_21 = arith.constant 0 : index
    %c0_22 = arith.constant 0 : index
    %30 = vector.load %arg6[%c0_21, %c0_22] : memref<2x128xf32, #tpu.memory_space<vmem>>, vector<2x128xf32>
    %cst_23 = arith.constant dense<0.000000e+00> : vector<2x128xf32>
    %31 = vector.multi_reduction <add>, %20, %cst_23 [1] : vector<2x2x128xf32> to vector<2x128xf32>
    %32 = arith.addf %30, %31 : vector<2x128xf32>
    %c0_24 = arith.constant 0 : index
    %c0_25 = arith.constant 0 : index
    %33 = vector.load %arg6[%c0_24, %c0_25] : memref<2x128xf32, #tpu.memory_space<vmem>>, vector<2x128xf32>
    tpu.vector_store %arg6[%c0_24, %c0_25], %32 {strides = array<i32>} : memref<2x128xf32, #tpu.memory_space<vmem>>, vector<2x128xf32>,
    %c0_i32_26 = arith.constant 0 : i32
    %34 = arith.cmpi eq, %arg0, %c0_i32_26 : i32
    %35 = arith.extui %34 : i1 to i32
    %c0_i32_27 = arith.constant 0 : i32
    %36 = arith.cmpi ne, %35, %c0_i32_27 : i32
    scf.if %36 {
      %c0_28 = arith.constant 0 : index
      %c0_29 = arith.constant 0 : index
      %37 = vector.load %arg4[%c0_28, %c0_29] : memref<2x128xf32, #tpu.memory_space<vmem>>, vector<2x128xf32>
      %cst_30 = arith.constant dense<0.000000e+00> : vector<2xf32>
      %38 = vector.multi_reduction <add>, %37, %cst_30 [1] : vector<2x128xf32> to vector<2xf32>
      %39 = vector.shape_cast %38 : vector<2xf32> to vector<2x1xf32>
      %c0_31 = arith.constant 0 : index
      %c0_32 = arith.constant 0 : index
      %40 = vector.load %arg5[%c0_31, %c0_32] : memref<2x128xf32, #tpu.memory_space<vmem>>, vector<2x128xf32>
      %cst_33 = arith.constant dense<0.000000e+00> : vector<2xf32>
      %41 = vector.multi_reduction <add>, %40, %cst_33 [1] : vector<2x128xf32> to vector<2xf32>
      %42 = vector.shape_cast %41 : vector<2xf32> to vector<2x1xf32>
      %c0_34 = arith.constant 0 : index
      %c0_35 = arith.constant 0 : index
      %43 = vector.load %arg6[%c0_34, %c0_35] : memref<2x128xf32, #tpu.memory_space<vmem>>, vector<2x128xf32>
      %cst_36 = arith.constant dense<0.000000e+00> : vector<2xf32>
      %44 = vector.multi_reduction <add>, %43, %cst_36 [1] : vector<2x128xf32> to vector<2xf32>
      %45 = vector.shape_cast %44 : vector<2xf32> to vector<2x1xf32>
      %cst_37 = arith.constant 2.000000e+00 : f32
      %46 = vector.broadcast %cst_37 : f32 to vector<2x1xf32>
      %47 = arith.mulf %46, %39 : vector<2x1xf32>
      %cst_38 = arith.constant 1.000000e+00 : f32
      %48 = vector.broadcast %cst_38 : f32 to vector<2x1xf32>
      %49 = arith.addf %47, %48 : vector<2x1xf32>
      %50 = arith.addf %42, %45 : vector<2x1xf32>
      %cst_39 = arith.constant 1.000000e+00 : f32
      %51 = vector.broadcast %cst_39 : f32 to vector<2x1xf32>
      %52 = arith.addf %50, %51 : vector<2x1xf32>
      %53 = arith.divf %49, %52 : vector<2x1xf32>
      %54 = vector.shape_cast %53 : vector<2x1xf32> to vector<1x2x1xf32>
      %cst_40 = arith.constant dense<0.000000e+00> : vector<1xf32>
      %55 = vector.multi_reduction <add>, %54, %cst_40 [1, 2] : vector<1x2x1xf32> to vector<1xf32>
      %56 = vector.shape_cast %55 : vector<1xf32> to vector<1x1x1xf32>
      %57 = vector.extract %56[0, 0, 0] : f32 from vector<1x1x1xf32>
      %58 = vector.broadcast %57 : f32 to vector<1x1xf32>
      %cst_41 = arith.constant 2.000000e+00 : f32
      %59 = vector.broadcast %cst_41 : f32 to vector<1x1xf32>
      %60 = arith.divf %58, %59 : vector<1x1xf32>
      %cst_42 = arith.constant 1.000000e+00 : f32
      %61 = vector.broadcast %cst_42 : f32 to vector<1x1xf32>
      %62 = arith.subf %61, %60 : vector<1x1xf32>
      %c0_43 = arith.constant 0 : index
      %c0_44 = arith.constant 0 : index
      %63 = vector.load %arg3[%c0_43, %c0_44] : memref<1x1xf32, #tpu.memory_space<vmem>>, vector<1x1xf32>
      tpu.vector_store %arg3[%c0_43, %c0_44], %62 {strides = array<i32>} : memref<1x1xf32, #tpu.memory_space<vmem>>, vector<1x1xf32>,
    } else {
    }
    return
  }
  func.func @transform_0(%arg0: i32) -> (i32, i32, i32, i32) {
    %c0_i32 = arith.constant 0 : i32
    %c0_i32_0 = arith.constant 0 : i32
    %c0_i32_1 = arith.constant 0 : i32
    %c0_i32_2 = arith.constant 0 : i32
    return %c0_i32, %c0_i32_0, %arg0, %c0_i32_1 : i32, i32, i32, i32
  }
  func.func @transform_1(%arg0: i32) -> (i32, i32, i32) {
    %c0_i32 = arith.constant 0 : i32
    %c0_i32_0 = arith.constant 0 : i32
    %c0_i32_1 = arith.constant 0 : i32
    return %c0_i32, %arg0, %c0_i32_0 : i32, i32, i32
  }
  func.func @transform_2(%arg0: i32) -> (i32, i32) {
    %c0_i32 = arith.constant 0 : i32
    %c0_i32_0 = arith.constant 0 : i32
    %c0_i32_1 = arith.constant 0 : i32
    return %c0_i32, %c0_i32_0 : i32, i32
  }
}

</mosaic_0001>

<bundles_post_ra>
// kernel: dice_loss.1
= control target key start
LH: loop header
LB: loop body
LE: loop exit
PB: predicated region body
PF: predicated region fallthrough
CT: control target
= control target key end

     0   :  { %v202_v2 = vmov 0.0   ;;  %s271_s0 = inlined_call_operand.vmem [shape: f32[2,2,2,128], index: 0, kind: input, shape index: {}]   ;;  %s272_s1 = inlined_call_operand.vmem [shape: f32[2,2,128], index: 1, kind: input, shape index: {}]   ;;  %s273_s2 = inlined_call_operand.hbm [shape: f32[1,1], index: 2, kind: output, shape index: {}]  }
   0x1   :  { %v21_v0 = vld [vmem:[%s271_s0] sm:$0x3]  ;;  %v22_v1 = vld [vmem:[%s271_s0 + $0x2] sm:$0x3]  ;;  %17 = vst [vmem:[#allocation3] sm:$0x3] %v202_v2 }
   0x2   :  { %v23_v3 = vld [vmem:[%s271_s0 + $0x4] sm:$0x3]  ;;  %v24_v4 = vld [vmem:[%s271_s0 + $0x6] sm:$0x3]  ;;  %v25_v5 = vld [vmem:[%s272_s1] sm:$0x3]  ;;  %v27_v6 = vsub.f32 %v21_v0, %v22_v1 }
   0x3   :  { %16 = vst [vmem:[#allocation2] sm:$0x3] %v202_v2  ;;  %18 = vst [vmem:[#allocation4] sm:$0x3] %v202_v2  ;;  %v26_v7 = vld [vmem:[%s272_s1 + $0x2] sm:$0x3]  ;;  %v28_v8 = vsub.f32 %v23_v3, %v24_v4 }
   0x4   :  { %vm39_vm0 = vcmp.ne.f32.partialorder %v25_v5, 255.0 }
   0x5   :  { %7 = vsyncpa [#allocation6], 0  ;;  %v29_v9 = vmul.f32 1.442695, %v27_v6  ;;  %vm40_vm1 = vcmp.ne.f32.partialorder %v26_v7, 255.0  ;;  %v43_v10 = vsel %vm39_vm0, %v25_v5, 0.0 }
   0x6   :  { %vm48_vm2 = vcmask 1041408   ;;  %v31_v11 = vmul.f32 1.442695, %v28_v8  ;;  %v44_v12 = vsel %vm40_vm1, %v26_v7, 0.0  ;;  %vm65_vm3 = vcmask 1041409   ;;  %s203_s1 = smov [#allocation5]  }
   0x7   :  { %v92_v13 = vsel %vm48_vm2, %v43_v10, 0.0  ;;  %168 = vpow2.f32 %v29_v9  ;;  %v99_v15 = vsel %vm48_vm2, %v44_v12, 0.0  ;;  %vm133_vm4 = vcmask 1024   ;;  %s156_s21 = sshll.u32 %s203_s1, 4  ;;  %s157_s21 = int_to_ptr.vmem [resolvable:$true] %s156_s21 }
   0x8   :  { %v93_v14 = vrot.slane %v92_v13, 4  ;;  %170 = vpow2.f32 %v31_v11  ;;  %v100_v16 = vrot.slane %v99_v15, 4  ;;  %v70_v0 = vld [vmem:[#allocation3] sm:$0x3]  ;;  %vm19_vm5 = vcmask 0   ;;  %s178_s22 = scalar_lea.vmem %s157_s21, 16  ;;  %p183_p1 = scmp.lt.s32.totalorder %s157_s21, %s157_s21 }
   0x9   :  { %20 = vst.msk [vmem:[#allocation5] sm:$0x1] %vm19_vm5, %v202_v2  ;;  %p179_p0 = scmp.ne.s32.totalorder %s157_s21, %s178_s22  ;;  %s182_s23 = scalar_lea.vmem %s157_s21, 32 }
   0xa   :  { %v94_v17 = vadd.f32 %v93_v14, %v92_v13  ;;  %v101_v18 = vadd.f32 %v100_v16, %v99_v15  ;;  %v91_v29 = vld [vmem:[#allocation4] sm:$0x3]  ;;  %v45_v6 = vld [vmem:[#allocation2] sm:$0x3]  ;;  %p184_p2 = scmp.lt.s32.totalorder %s182_s23, %s178_s22 }
   0xc   :  { %v95_v19 = vrot.slane %v94_v17, 2  ;;  %v102_v20 = vrot.slane %v101_v18, 2  ;;  %p185_p3 = por %p184_p2, %p183_p1 }
   0xe   :  { %v96_v21 = vadd.f32 %v95_v19, %v94_v17  ;;  %v103_v22 = vadd.f32 %v102_v20, %v101_v18  ;;  %p186_p4 = pnand %p185_p3, %p179_p0 }
  0x10   :  { %v97_v23 = vrot.slane %v96_v21, 1  ;;  %v104_v24 = vrot.slane %v103_v22, 1 }
  0x11   :  { %v169_v25 = vpop.eup %168 }
  0x12   :  { %v98_v26 = vadd.f32 %v97_v23, %v96_v21  ;;  %v171_v27 = vpop.eup %170  ;;  %v33_v28 = vadd.f32 1.0, %v169_v25  ;;  %v105_v30 = vadd.f32 %v104_v24, %v103_v22 }
  0x13   :  { %v34_v31 = vadd.f32 1.0, %v171_v27 }
  0x14   :  { %172 = vrcp.f32 %v33_v28  ;;  %v108_v32 = vsel %vm65_vm3, %v105_v30, %v98_v26 }
  0x15   :  { %174 = vrcp.f32 %v34_v31  ;;  %v110_v33 = vadd.f32 %v108_v32, %v91_v29 }
  0x17   :  { %111 = vst [vmem:[#allocation4] sm:$0x3] %v110_v33 }
  0x1e   :  { %v173_v34 = vpop.eup %172 }
  0x1f   :  { %v175_v35 = vpop.eup %174  ;;  %v41_v36 = vsel %vm39_vm0, %v173_v34, 0.0 }
  0x20   :  { %v42_v37 = vsel %vm40_vm1, %v175_v35, 0.0  ;;  %v46_v38 = vmul.f32 %v43_v10, %v41_v36  ;;  %v71_v39 = vsel %vm48_vm2, %v41_v36, 0.0 }
  0x21   :  { %v47_v40 = vmul.f32 %v44_v12, %v42_v37  ;;  %v72_v41 = vrot.slane %v71_v39, 4  ;;  %v78_v42 = vsel %vm48_vm2, %v42_v37, 0.0  ;;  %v123_v12 = vld [vmem:[#allocation4] sm:$0x3] }
  0x22   :  { %v49_v43 = vsel %vm48_vm2, %v46_v38, 0.0  ;;  %v79_v44 = vrot.slane %v78_v42, 4  ;;  %v124_v15 = vsel %vm48_vm2, %v123_v12, 0.0 }
  0x23   :  { %v50_v45 = vrot.slane %v49_v43, 4  ;;  %v56_v46 = vsel %vm48_vm2, %v47_v40, 0.0  ;;  %v73_v47 = vadd.f32 %v72_v41, %v71_v39 }
  0x24   :  { %v57_v48 = vrot.slane %v56_v46, 4  ;;  %v80_v49 = vadd.f32 %v79_v44, %v78_v42 }
  0x25   :  { %v51_v50 = vadd.f32 %v50_v45, %v49_v43  ;;  %v74_v51 = vrot.slane %v73_v47, 2 }
  0x26   :  { %v58_v52 = vadd.f32 %v57_v48, %v56_v46  ;;  %v81_v53 = vrot.slane %v80_v49, 2 }
  0x27   :  { %v52_v54 = vrot.slane %v51_v50, 2  ;;  %v75_v55 = vadd.f32 %v74_v51, %v73_v47 }
  0x28   :  { %v59_v56 = vrot.slane %v58_v52, 2  ;;  %v82_v57 = vadd.f32 %v81_v53, %v80_v49 }
  0x29   :  { %v53_v58 = vadd.f32 %v52_v54, %v51_v50  ;;  %v76_v59 = vrot.slane %v75_v55, 1 }
  0x2a   :  { %v60_v60 = vadd.f32 %v59_v56, %v58_v52  ;;  %v83_v61 = vrot.slane %v82_v57, 1 }
  0x2b   :  { %v77_v62 = vadd.f32 %v76_v59, %v75_v55  ;;  %v54_v63 = vrot.slane %v53_v58, 1 }
  0x2c   :  { %v84_v1 = vadd.f32 %v83_v61, %v82_v57  ;;  %v61_v3 = vrot.slane %v60_v60, 1 }
  0x2d   :  { %v55_v4 = vadd.f32 %v54_v63, %v53_v58 }
  0x2e   :  { %v87_v5 = vsel %vm65_vm3, %v84_v1, %v77_v62  ;;  %v62_v7 = vadd.f32 %v61_v3, %v60_v60 }
  0x2f   :  { %v89_v8 = vadd.f32 %v87_v5, %v70_v0 }
  0x30   :  { %v66_v9 = vsel %vm65_vm3, %v62_v7, %v55_v4 }
  0x31   :  { %90 = vst [vmem:[#allocation3] sm:$0x3] %v89_v8  ;;  %v68_v10 = vadd.f32 %v66_v9, %v45_v6 }
  0x33   :  { %69 = vst [vmem:[#allocation2] sm:$0x3] %v68_v10 }
  0x38   :  { %v119_v11 = vld [vmem:[#allocation3] sm:$0x3] }
  0x39   :  { %v120_v13 = vsel %vm48_vm2, %v119_v11, 0.0 }
  0x3a   :  { %121 = vadd.xlane.f32.xlu0 %v120_v13  ;;  %v115_v14 = vld [vmem:[#allocation2] sm:$0x3] }
  0x3b   :  { %v116_v16 = vsel %vm48_vm2, %v115_v14, 0.0 }
  0x3c   :  { %117 = vadd.xlane.f32.xlu1 %v116_v16 }
  0x3e   :  { %125 = vadd.xlane.f32.xlu0 %v124_v15 }
  0xc7   :  { %v122_v17 = vpop.xlane.xlu0 %121 }
  0xc9   :  { %v118_v21 = vpop.xlane.xlu1 %117 }
  0xca   :  { %v127_v22 = vmul.f32 2.0, %v118_v21 }
  0xcb   :  { %v126_v18 = vpop.xlane.xlu0 %125 }
  0xcc   :  { %v129_v19 = vadd.f32 %v126_v18, %v122_v17  ;;  %v128_v23 = vadd.f32 1.0, %v127_v22 }
  0xce   :  { %v130_v20 = vadd.f32 1.0, %v129_v19 }
  0xd0   :  { %176 = vrcp.f32 %v130_v20 }
  0xda   :  { %v177_v24 = vpop.eup %176 }
  0xdb   :  { %v132_v25 = vmul.f32 %v177_v24, %v128_v23 }
  0xdd   :  { %v134_v26 = vsel %vm133_vm4, %v132_v25, 0.0 }
  0xde   :  { %135 = vadd.xlane.f32.xlu1 %v134_v26 }
 0x16b   :  { %v136_v27 = vpop.xlane.xlu1 %135 }
 0x16c   :  { %v137_v28 = vrot.slane %v136_v27, 4 }
 0x16e   :  { %v138_v29 = vadd.f32 %v137_v28, %v136_v27 }
 0x170   :  { %v139_v30 = vrot.slane %v138_v29, 2 }
 0x172   :  { %v140_v31 = vadd.f32 %v139_v30, %v138_v29 }
 0x174   :  { %v141_v32 = vrot.slane %v140_v31, 1 }
 0x176   :  { %v142_v33 = vadd.f32 %v141_v32, %v140_v31 }
 0x178   :  { %164 = vpush %v142_v33 }
 0x1a9   :  { %s165_s0 = spop %164 }
 0x1aa   :  { %v144_v34 = vstv %s165_s0 }
 0x1ab   :  { %v146_v35 = vmul.f32 0.5, %v144_v34 }
 0x1ad   :  { %v147_v36 = vsub.f32 1.0, %v146_v35 }
 0x1af   :  { %149 = vst.msk [vmem:[#allocation5] sm:$0x1] %vm19_vm5, %v147_v36 }
 0x1b0   :  { %189 = shalt.err (!%p186_p4)
}
 0x1b1   :  { %s190_s26 = scalar_lea.hbm %s273_s2, 16 }
 0x1b2   :  { %p191_p5 = scmp.ne.s32.totalorder %s273_s2, %s190_s26  ;;  %p194_p6 = scmp.lt.u32.totalorder %s190_s26, %s273_s2 }
 0x1b4   :  { %p196_p7 = pnand %p194_p6, %p191_p5 }
 0x1b6   :  { %199 = shalt.err (!%p196_p7)
}
 0x1b7   :  { %159 = dma.vmem_to_hbm [thread:$0]  %s157_s21, 16, %s273_s2, [#allocation6]  }
 0x1b8   :  { %200 = dma.done.wait [#allocation6], 16  }
 0x1b9   :  { %201 = vsyncadd [#allocation6], 4294967280 }
 0x1ba   :  { %163 = vsyncpa [#allocation6], 1 }

</bundles_post_ra>
